<compile_context>
chip_gen: v7x
topology: tpu7x:2x2x1
jax: 0.10.0
libtpu: 0.0.40
codegen_flags: <defaults>
</compile_context>

<pallas_src>
import functools
import math

import jax
import jax.numpy as jnp
from jax.experimental import pallas as pl
from jax.experimental.pallas import tpu as pltpu

GRID_NUNQ = 384
BN_EPS = 1e-5
_LANES = 128
_TARGET_BLOCK_BYTES = 2 << 20          # ~2 MiB x-blocks (review: 2-4 MiB sweet spot)
_VMEM_LIMIT_BYTES = 32 * 1024 * 1024   # explicit scoped-VMEM limit, valid on v5e/v6e/v7x
_MIN_GRID_STEPS = 8                    # >= 4 steps per TensorCore on v7x megacore


# ---------------------------------------------------------------------------
# Tiling plan
# ---------------------------------------------------------------------------
def _sublane_multiple(dtype):
    # dtype-aware second-minor multiple: 8 for f32, 16 for bf16, 32 for int8/fp8
    return max(8, 32 // jnp.dtype(dtype).itemsize)


def _plan(B, T, H, dtype):
    """Pick the streaming layout.

    Returns (s, Tg, C, r): x is viewed as (B, Tg, C) with Tg = T // s, C = s * H
    (lane-dense whenever T allows), streamed in (B, r, C) blocks over Tg // r steps.
    """
    itemsize = jnp.dtype(dtype).itemsize
    sub = _sublane_multiple(dtype)
    s = _LANES // math.gcd(H, _LANES)           # smallest s with (s*H) % 128 == 0
    if s > 1 and T % s == 0:
        Tg, C = T // s, s * H
    else:
        s, Tg, C = 1, T, H                      # fallback: plain (B, T, H) layout

    divisors = [r for r in range(1, Tg + 1) if Tg % r == 0]
    cands = [r for r in divisors if (r % sub == 0) or (r == Tg)]
    blk = lambda r: B * r * C * itemsize
    # hard VMEM feasibility: ~ 2x in + 2x out + resident params ~= 5x block
    feasible = [r for r in cands if 5 * blk(r) <= _VMEM_LIMIT_BYTES] or [min(cands)]
    sized = [r for r in feasible if blk(r) <= _TARGET_BLOCK_BYTES] or [min(feasible)]
    for min_steps in (_MIN_GRID_STEPS, 4, 2, 1):
        ok = [r for r in sized if Tg // r >= min_steps]
        if ok:
            return s, Tg, C, max(ok)
    return s, Tg, C, max(sized)                 # unreachable


# ---------------------------------------------------------------------------
# Kernels
# ---------------------------------------------------------------------------
def _gather_rows(gid_ref, table_ref, batch):
    """Exact row gather table[g_id] -> (batch, C) f32.  gid lives in SMEM (scalar
    prefetch); table is a resident VMEM block.  No MXU, bit-exact, ids clamped."""
    g_max = table_ref.shape[0] - 1
    rows = []
    for i in range(batch):                       # batch is small & static
        g = jnp.clip(gid_ref[i], 0, g_max)
        rows.append(table_ref[pl.ds(g, 1), :].astype(jnp.float32))
    return jnp.concatenate(rows, axis=0) if batch > 1 else rows[0]


def _fused_coord_kernel(gid_ref, m_ref, b_ref, gamma_ref, beta_ref, x_ref, o_ref,
                        *, batch, eps):
    # hn recomputed every grid step: tiny (B rows) and hidden under the HBM-bound add,
    # which keeps the grid axis "parallel"-safe (no program_id==0-guarded state).
    h = _gather_rows(gid_ref, m_ref, batch) + b_ref[...]            # (B, C) f32
    mean = jnp.mean(h, axis=0, keepdims=True)                       # full-batch BN stats
    var = jnp.mean((h - mean) ** 2, axis=0, keepdims=True)          # biased (training BN)
    hn = (h - mean) * jax.lax.rsqrt(var + eps) * gamma_ref[...] + beta_ref[...]
    o_ref[...] = (x_ref[...].astype(jnp.float32) + hn[:, None, :]).astype(o_ref.dtype)


def _fused_embed_kernel(gid_ref, table_ref, x_ref, o_ref, *, batch):
    hn = _gather_rows(gid_ref, table_ref, batch)                     # (B, C) f32, exact
    o_ref[...] = (x_ref[...].astype(jnp.float32) + hn[:, None, :]).astype(o_ref.dtype)


# ---------------------------------------------------------------------------
# Shared pallas_call wrapper
# ---------------------------------------------------------------------------
def _run_fused(kernel, x, g_id, tables, s, Tg, C, r):
    """tables: list of (array, block_shape) resident inputs (constant index_map)."""
    B, T, H = x.shape
    itemsize = jnp.dtype(x.dtype).itemsize
    nsteps = Tg // r
    x_v = x.reshape(B, Tg, C)

    table_bytes = sum(int(a.size) * jnp.dtype(a.dtype).itemsize for a, _ in tables)
    cost = pl.CostEstimate(flops=2 * B * T * H, transcendentals=0,
                           bytes_accessed=2 * B * T * H * itemsize + table_bytes)

    in_specs = [pl.BlockSpec(shape, lambda j, gid: (0, 0)) for _, shape in tables]
    in_specs.append(pl.BlockSpec((B, r, C), lambda j, gid: (0, j, 0)))

    out = pl.pallas_call(
        kernel,
        out_shape=jax.ShapeDtypeStruct((B, Tg, C), x.dtype),
        grid_spec=pltpu.PrefetchScalarGridSpec(
            num_scalar_prefetch=1,                      # g_id -> SMEM scalars
            grid=(nsteps,),
            in_specs=in_specs,
            out_specs=pl.BlockSpec((B, r, C), lambda j, gid: (0, j, 0)),
        ),
        compiler_params=pltpu.CompilerParams(
            dimension_semantics=("parallel",),          # shard steps across v7x's 2 TCs
            vmem_limit_bytes=_VMEM_LIMIT_BYTES),
        cost_estimate=cost,
    )(g_id.astype(jnp.int32), *[a for a, _ in tables], x_v)
    return out.reshape(B, T, H)


# ---------------------------------------------------------------------------
# Public entry points (match the two PyTorch forward branches)
# ---------------------------------------------------------------------------
def horizontal_encoding_from_coord(x, g_id, dist_emb, fc_w, fc_b, bn_gamma, bn_beta):
    """from_coord=True.  x: (B,T,H); g_id: (B,) i32; dist_emb: (G,G); fc_w: (H,G)."""
    B, T, H = x.shape
    G = dist_emb.shape[0]
    s, Tg, C, r = _plan(B, T, H, x.dtype)

    # Fold the fc weight into the distance table in plain jitted JAX (outside kernel):
    #   fc(dist_emb[g]) == (dist_emb @ W^T)[g] + b
    m = jnp.dot(dist_emb.astype(jnp.float32), fc_w.astype(jnp.float32).T)    # (G, H)
    rep = (1, s)
    m_t = jnp.tile(m, rep)                                                   # (G, C)
    b_t = jnp.tile(fc_b.reshape(1, H).astype(jnp.float32), rep)              # (1, C)
    g_t = jnp.tile(bn_gamma.reshape(1, H).astype(jnp.float32), rep)
    be_t = jnp.tile(bn_beta.reshape(1, H).astype(jnp.float32), rep)

    kernel = functools.partial(_fused_coord_kernel, batch=B, eps=BN_EPS)
    tables = [(m_t, (G, C)), (b_t, (1, C)), (g_t, (1, C)), (be_t, (1, C))]
    return _run_fused(kernel, x, g_id, tables, s, Tg, C, r)


def horizontal_encoding_embed(x, g_id, emb_table):
    """from_coord=False.  x: (B,T,H); g_id: (B,) i32; emb_table: (G,H)."""
    B, T, H = x.shape
    G = emb_table.shape[0]
    s, Tg, C, r = _plan(B, T, H, x.dtype)
    tab_t = jnp.tile(emb_table.astype(jnp.float32), (1, s))                  # (G, C)
    kernel = functools.partial(_fused_embed_kernel, batch=B)
    return _run_fused(kernel, x, g_id, [(tab_t, (G, C))], s, Tg, C, r)


# ---------------------------------------------------------------------------
# Parameter construction (deterministic, synthetic)
# ---------------------------------------------------------------------------
def make_distance_embedding(key, n=GRID_NUNQ):
    """Synthetic replacement for load_grid_embedding(): haversine distances of
    deterministic lat/lon, normalized by the max distance."""
    k1, k2 = jax.random.split(key)
    lat = jax.random.uniform(k1, (n,), minval=-jnp.pi / 2, maxval=jnp.pi / 2)
    lon = jax.random.uniform(k2, (n,), minval=-jnp.pi, maxval=jnp.pi)
    dlat = lat[None, :] - lat[:, None]
    dlon = lon[None, :] - lon[:, None]
    a = (jnp.sin(dlat / 2.0) ** 2
         + jnp.cos(lat[:, None]) * jnp.cos(lat[None, :]) * jnp.sin(dlon / 2.0) ** 2)
    dist = 2.0 * jnp.arcsin(jnp.sqrt(jnp.clip(a, 0.0, 1.0)))
    return (dist / dist.max()).astype(jnp.float32)


# ---------------------------------------------------------------------------
# References (pure JAX) for correctness checks
# ---------------------------------------------------------------------------
def ref_from_coord(x, g_id, dist_emb, fc_w, fc_b, gamma, beta):
    e = dist_emb[g_id]                             # (B, G)
    h = e @ fc_w.T + fc_b                          # (B, H)
    mean = h.mean(axis=0)
    var = ((h - mean) ** 2).mean(axis=0)           # biased (training-mode BN)
    hn = (h - mean) / jnp.sqrt(var + BN_EPS) * gamma + beta
    return x + hn[:, None, :]


def ref_embed(x, g_id, table):
    return x + table[g_id][:, None, :]


# ---------------------------------------------------------------------------
if __name__ == "__main__":
    B, T, H = 4, 8, 32

    key = jax.random.PRNGKey(0)
    k_x, k_id, k_emb, k_w, k_b, k_tab = jax.random.split(key, 6)

    x = jax.random.normal(k_x, (B, T, H), dtype=jnp.float32)
    g_id = jax.random.randint(k_id, (B,), 0, GRID_NUNQ, dtype=jnp.int32)

    # from_coord=True parameters
    dist_emb = make_distance_embedding(k_emb)                      # (384, 384)
    bound = 1.0 / jnp.sqrt(jnp.float32(GRID_NUNQ))
    fc_w = jax.random.uniform(k_w, (H, GRID_NUNQ), minval=-bound, maxval=bound)
    fc_b = jax.random.uniform(k_b, (H,), minval=-bound, maxval=bound)
    bn_gamma = jnp.ones((H,), jnp.float32)
    bn_beta = jnp.zeros((H,), jnp.float32)

    # from_coord=False parameters
    emb_table = jax.random.normal(k_tab, (GRID_NUNQ, H), dtype=jnp.float32)

    out_coord = horizontal_encoding_from_coord(
        x, g_id, dist_emb, fc_w, fc_b, bn_gamma, bn_beta)
    out_coord = jax.block_until_ready(out_coord)
    ref_c = ref_from_coord(x, g_id, dist_emb, fc_w, fc_b, bn_gamma, bn_beta)
    assert out_coord.shape == (B, T, H)
    # fc is folded into the table (same math, different reduction lowering) -> small slack
    assert jnp.allclose(out_coord, ref_c, rtol=1e-3, atol=1e-3), "from_coord mismatch"

    out_emb = horizontal_encoding_embed(x, g_id, emb_table)
    out_emb = jax.block_until_ready(out_emb)
    ref_e = ref_embed(x, g_id, emb_table)
    assert out_emb.shape == (B, T, H)
    assert jnp.allclose(out_emb, ref_e, rtol=1e-5, atol=1e-5), "embedding mismatch"

    print("KERNEL_OK")
</pallas_src>

<mosaic_0001>
module attributes {stable_mosaic.version = 11 : i64} {
  func.func @_fused_coord_kernel(%arg0: i32, %arg1: memref<4xi32, #tpu.memory_space<smem>>, %arg2: memref<384x128xf32, #tpu.memory_space<vmem>>, %arg3: memref<1x128xf32, #tpu.memory_space<vmem>>, %arg4: memref<1x128xf32, #tpu.memory_space<vmem>>, %arg5: memref<1x128xf32, #tpu.memory_space<vmem>>, %arg6: memref<4x2x128xf32, #tpu.memory_space<vmem>>, %arg7: memref<4x2x128xf32, #tpu.memory_space<vmem>>) attributes {dimension_semantics = [#tpu.dimension_semantics<parallel>], iteration_bounds = array<i64: 1>, scalar_prefetch = 1 : i64, scratch_operands = 0 : i64, tpu.core_type = #tpu.core_type<tc>, window_params = [{pipeline_mode = #tpu.pipeline_mode<synchronous>, transform_indices = @transform_0, window_bounds = array<i64: 384, 128>}, {pipeline_mode = #tpu.pipeline_mode<synchronous>, transform_indices = @transform_1, window_bounds = array<i64: 1, 128>}, {pipeline_mode = #tpu.pipeline_mode<synchronous>, transform_indices = @transform_2, window_bounds = array<i64: 1, 128>}, {pipeline_mode = #tpu.pipeline_mode<synchronous>, transform_indices = @transform_3, window_bounds = array<i64: 1, 128>}, {transform_indices = @transform_4, window_bounds = array<i64: 4, 2, 128>}, {transform_indices = @transform_5, window_bounds = array<i64: 4, 2, 128>}]} {
    %c0 = arith.constant 0 : index
    %0 = memref.load %arg1[%c0] : memref<4xi32, #tpu.memory_space<smem>>
    %c0_i32 = arith.constant 0 : i32
    %c383_i32 = arith.constant 383 : i32
    %1 = arith.maxsi %c0_i32, %0 : i32
    %2 = arith.minsi %c383_i32, %1 : i32
    %3 = arith.index_cast %2 : i32 to index
    %c0_0 = arith.constant 0 : index
    %4 = vector.load %arg2[%3, %c0_0] : memref<384x128xf32, #tpu.memory_space<vmem>>, vector<1x128xf32>
    %c1 = arith.constant 1 : index
    %5 = memref.load %arg1[%c1] : memref<4xi32, #tpu.memory_space<smem>>
    %c0_i32_1 = arith.constant 0 : i32
    %c383_i32_2 = arith.constant 383 : i32
    %6 = arith.maxsi %c0_i32_1, %5 : i32
    %7 = arith.minsi %c383_i32_2, %6 : i32
    %8 = arith.index_cast %7 : i32 to index
    %c0_3 = arith.constant 0 : index
    %9 = vector.load %arg2[%8, %c0_3] : memref<384x128xf32, #tpu.memory_space<vmem>>, vector<1x128xf32>
    %c2 = arith.constant 2 : index
    %10 = memref.load %arg1[%c2] : memref<4xi32, #tpu.memory_space<smem>>
    %c0_i32_4 = arith.constant 0 : i32
    %c383_i32_5 = arith.constant 383 : i32
    %11 = arith.maxsi %c0_i32_4, %10 : i32
    %12 = arith.minsi %c383_i32_5, %11 : i32
    %13 = arith.index_cast %12 : i32 to index
    %c0_6 = arith.constant 0 : index
    %14 = vector.load %arg2[%13, %c0_6] : memref<384x128xf32, #tpu.memory_space<vmem>>, vector<1x128xf32>
    %c3 = arith.constant 3 : index
    %15 = memref.load %arg1[%c3] : memref<4xi32, #tpu.memory_space<smem>>
    %c0_i32_7 = arith.constant 0 : i32
    %c383_i32_8 = arith.constant 383 : i32
    %16 = arith.maxsi %c0_i32_7, %15 : i32
    %17 = arith.minsi %c383_i32_8, %16 : i32
    %18 = arith.index_cast %17 : i32 to index
    %c0_9 = arith.constant 0 : index
    %19 = vector.load %arg2[%18, %c0_9] : memref<384x128xf32, #tpu.memory_space<vmem>>, vector<1x128xf32>
    %20 = tpu.concatenate %4, %9, %14, %19 in 0 : vector<1x128xf32>, vector<1x128xf32>, vector<1x128xf32>, vector<1x128xf32> -> vector<4x128xf32>
    %c0_10 = arith.constant 0 : index
    %c0_11 = arith.constant 0 : index
    %21 = vector.load %arg3[%c0_10, %c0_11] : memref<1x128xf32, #tpu.memory_space<vmem>>, vector<1x128xf32>
    %22 = vector.broadcast %21 : vector<1x128xf32> to vector<4x128xf32>
    %23 = arith.addf %20, %22 : vector<4x128xf32>
    %cst = arith.constant dense<0.000000e+00> : vector<128xf32>
    %24 = vector.multi_reduction <add>, %23, %cst [0] : vector<4x128xf32> to vector<128xf32>
    %25 = vector.shape_cast %24 : vector<128xf32> to vector<1x128xf32>
    %cst_12 = arith.constant 4.000000e+00 : f32
    %26 = vector.broadcast %cst_12 : f32 to vector<1x128xf32>
    %27 = arith.divf %25, %26 : vector<1x128xf32>
    %28 = vector.broadcast %27 : vector<1x128xf32> to vector<4x128xf32>
    %29 = arith.subf %23, %28 : vector<4x128xf32>
    %30 = arith.mulf %29, %29 : vector<4x128xf32>
    %cst_13 = arith.constant dense<0.000000e+00> : vector<128xf32>
    %31 = vector.multi_reduction <add>, %30, %cst_13 [0] : vector<4x128xf32> to vector<128xf32>
    %32 = vector.shape_cast %31 : vector<128xf32> to vector<1x128xf32>
    %cst_14 = arith.constant 4.000000e+00 : f32
    %33 = vector.broadcast %cst_14 : f32 to vector<1x128xf32>
    %34 = arith.divf %32, %33 : vector<1x128xf32>
    %35 = vector.broadcast %27 : vector<1x128xf32> to vector<4x128xf32>
    %36 = arith.subf %23, %35 : vector<4x128xf32>
    %cst_15 = arith.constant 9.99999974E-6 : f32
    %37 = vector.broadcast %cst_15 : f32 to vector<1x128xf32>
    %38 = arith.addf %34, %37 : vector<1x128xf32>
    %39 = math.rsqrt %38 : vector<1x128xf32>
    %40 = vector.broadcast %39 : vector<1x128xf32> to vector<4x128xf32>
    %41 = arith.mulf %36, %40 : vector<4x128xf32>
    %c0_16 = arith.constant 0 : index
    %c0_17 = arith.constant 0 : index
    %42 = vector.load %arg4[%c0_16, %c0_17] : memref<1x128xf32, #tpu.memory_space<vmem>>, vector<1x128xf32>
    %43 = vector.broadcast %42 : vector<1x128xf32> to vector<4x128xf32>
    %44 = arith.mulf %41, %43 : vector<4x128xf32>
    %c0_18 = arith.constant 0 : index
    %c0_19 = arith.constant 0 : index
    %45 = vector.load %arg5[%c0_18, %c0_19] : memref<1x128xf32, #tpu.memory_space<vmem>>, vector<1x128xf32>
    %46 = vector.broadcast %45 : vector<1x128xf32> to vector<4x128xf32>
    %47 = arith.addf %44, %46 : vector<4x128xf32>
    %c0_20 = arith.constant 0 : index
    %c0_21 = arith.constant 0 : index
    %c0_22 = arith.constant 0 : index
    %48 = vector.load %arg6[%c0_20, %c0_21, %c0_22] : memref<4x2x128xf32, #tpu.memory_space<vmem>>, vector<4x2x128xf32>
    %49 = vector.shape_cast %47 : vector<4x128xf32> to vector<4x1x128xf32>
    %50 = vector.broadcast %49 : vector<4x1x128xf32> to vector<4x2x128xf32>
    %51 = arith.addf %48, %50 : vector<4x2x128xf32>
    %c0_23 = arith.constant 0 : index
    %c0_24 = arith.constant 0 : index
    %c0_25 = arith.constant 0 : index
    %52 = vector.load %arg7[%c0_23, %c0_24, %c0_25] : memref<4x2x128xf32, #tpu.memory_space<vmem>>, vector<4x2x128xf32>
    tpu.vector_store %arg7[%c0_23, %c0_24, %c0_25], %51 {strides = array<i32>} : memref<4x2x128xf32, #tpu.memory_space<vmem>>, vector<4x2x128xf32>,
    return
  }
  func.func @transform_0(%arg0: i32, %arg1: memref<4xi32, #tpu.memory_space<smem>>) -> (i32, i32) {
    %c0_i32 = arith.constant 0 : i32
    %c0_i32_0 = arith.constant 0 : i32
    %c0_i32_1 = arith.constant 0 : i32
    return %c0_i32, %c0_i32_0 : i32, i32
  }
  func.func @transform_1(%arg0: i32, %arg1: memref<4xi32, #tpu.memory_space<smem>>) -> (i32, i32) {
    %c0_i32 = arith.constant 0 : i32
    %c0_i32_0 = arith.constant 0 : i32
    %c0_i32_1 = arith.constant 0 : i32
    return %c0_i32, %c0_i32_0 : i32, i32
  }
  func.func @transform_2(%arg0: i32, %arg1: memref<4xi32, #tpu.memory_space<smem>>) -> (i32, i32) {
    %c0_i32 = arith.constant 0 : i32
    %c0_i32_0 = arith.constant 0 : i32
    %c0_i32_1 = arith.constant 0 : i32
    return %c0_i32, %c0_i32_0 : i32, i32
  }
  func.func @transform_3(%arg0: i32, %arg1: memref<4xi32, #tpu.memory_space<smem>>) -> (i32, i32) {
    %c0_i32 = arith.constant 0 : i32
    %c0_i32_0 = arith.constant 0 : i32
    %c0_i32_1 = arith.constant 0 : i32
    return %c0_i32, %c0_i32_0 : i32, i32
  }
  func.func @transform_4(%arg0: i32, %arg1: memref<4xi32, #tpu.memory_space<smem>>) -> (i32, i32, i32) {
    %c0_i32 = arith.constant 0 : i32
    %c0_i32_0 = arith.constant 0 : i32
    %c0_i32_1 = arith.constant 0 : i32
    return %c0_i32, %arg0, %c0_i32_0 : i32, i32, i32
  }
  func.func @transform_5(%arg0: i32, %arg1: memref<4xi32, #tpu.memory_space<smem>>) -> (i32, i32, i32) {
    %c0_i32 = arith.constant 0 : i32
    %c0_i32_0 = arith.constant 0 : i32
    %c0_i32_1 = arith.constant 0 : i32
    return %c0_i32, %arg0, %c0_i32_0 : i32, i32, i32
  }
}

</mosaic_0001>

<bundles_post_ra>
// kernel: tpu_custom_call.1
= control target key start
LH: loop header
LB: loop body
LE: loop exit
PB: predicated region body
PF: predicated region fallthrough
CT: control target
= control target key end

     0   :  { %s412_s0 = inlined_call_operand.hbm [shape: s32[4], index: 0, kind: input, shape index: {}]   ;;  %s413_s1 = inlined_call_operand.hbm [shape: f32[384,128], index: 1, kind: input, shape index: {}]   ;;  %s414_s2 = inlined_call_operand.vmem [shape: f32[1,128], index: 2, kind: input, shape index: {}]   ;;  %s415_s3 = inlined_call_operand.vmem [shape: f32[1,128], index: 3, kind: input, shape index: {}]   ;;  %s416_s4 = inlined_call_operand.vmem [shape: f32[1,128], index: 4, kind: input, shape index: {}]   ;;  %s417_s5 = inlined_call_operand.vmem [shape: f32[4,2,128], index: 5, kind: input, shape index: {}]   ;;  %s418_s6 = inlined_call_operand.hbm [shape: f32[4,2,128], index: 6, kind: output, shape index: {}]  }
   0x1   :  { %s252_s23 = scalar_lea.hbm %s412_s0, 16 }
   0x2   :  { %p253_p0 = scmp.ne.s32.totalorder %s412_s0, %s252_s23  ;;  %p256_p1 = scmp.lt.u32.totalorder %s252_s23, %s412_s0 }
   0x4   :  { %p258_p2 = pnand %p256_p1, %p253_p0 }
   0x6   :  { %261 = shalt.err (!%p258_p2)  }
   0x7   :  { %s312_s28 = smov [#allocation3]  }
   0x8   :  { %12 = dma.hbm_to_smem %s412_s0, 16, %s312_s28, [#allocation2] }
   0x9   :  { %306 = dma.done.wait [#allocation2], 16 }
   0xa   :  { %307 = vsyncadd [#allocation2], 4294967280 }
   0xb   :  { %14 = sfence }
   0xc   :  { %15 = vsyncpa [#allocation5], 0 }
   0xd   :  { %16 = vsyncpa [#allocation6], 0  ;;  %s313_s7 = smov [#allocation4]   ;;  %s262_s11 = scalar_lea.hbm %s413_s1, 6144 }
   0xe   :  { %s22_s8 = sshll.u32 %s313_s7, 4  ;;  %p263_p3 = scmp.ne.s32.totalorder %s413_s1, %s262_s11  ;;  %s23_s8 = int_to_ptr.vmem [resolvable:$true] %s22_s8 }
   0xf   :  { %p266_p4 = scmp.lt.u32.totalorder %s262_s11, %s413_s1 }
  0x11   :  { %p268_p5 = pnand %p266_p4, %p263_p3 }
  0x13   :  { %271 = shalt.err (!%p268_p5)
}
  0x14   :  { %s272_s0 = scalar_lea.vmem %s23_s8, 6144  ;;  %p277_p7 = scmp.lt.s32.totalorder %s23_s8, %s23_s8 }
  0x15   :  { %p273_p6 = scmp.ne.s32.totalorder %s23_s8, %s272_s0  ;;  %p278_p8 = scmp.lt.s32.totalorder %s272_s0, %s272_s0 }
  0x17   :  { %p279_p9 = por %p278_p8, %p277_p7 }
  0x19   :  { %p280_p10 = pnand %p279_p9, %p273_p6 }
  0x1b   :  { %283 = shalt.err (!%p280_p10)
}
  0x1c   :  { %s314_s16 = smov 128   ;;  %s315_s17 = smov 8  }
  0x1d   :  { %28 = dma.hbm_to_vmem [thread:$0]  %s413_s1, 6144, %s23_s8, [#allocation5], %s314_s16, %s314_s16, %s315_s17  }
  0x1e   :  { %308 = dma.done.wait [#allocation5], 6144  }
  0x1f   :  { %309 = vsyncadd [#allocation5], 4294961152  ;;  %s40_s20 = sld [smem:[#allocation3]]  ;;  %s213_s21 = sld [smem:[#allocation3 + $0x1]]  ;;  %vm77_vm0 = vcmask 1040384   ;;  %vm79_vm1 = vcmask 1041408   ;;  %v138_v33 = vlaneseq }
  0x20   :  { %s219_s22 = sld [smem:[#allocation3 + $0x2]]  ;;  %s225_s23 = sld [smem:[#allocation3 + $0x3]]  ;;  %vm81_vm2 = vcmask 1042432   ;;  %v231_v9 = vld [vmem:[%s414_s2] ss:$0 sm:$0xff]  ;;  %vm91_vm3 = vcmask 1043456  }
  0x21   :  { %v316_v31 = vmov 1966171168   ;;  %v139_v35 = vshrl.u32 %v138_v33, 7  ;;  %v232_v37 = vld [vmem:[%s415_s3] ss:$0 sm:$0xff]  ;;  %s317_s14 = smov [#allocation7]  }
  0x22   :  { %v136_v32 = vunpack.c.l.s4 %v316_v31  ;;  %v233_v39 = vld [vmem:[%s416_s4] ss:$0 sm:$0xff]  ;;  %v131_v51 = vld [vmem:[%s417_s5 + $0x2] sm:$0x3]  ;;  %v132_v52 = vld [vmem:[%s417_s5 + $0x4] sm:$0x3] }
  0x23   :  { %v161_v44 = vsub.s32 0, %v139_v35  ;;  %v130_v47 = vld [vmem:[%s417_s5] sm:$0x3]  ;;  %v133_v57 = vld [vmem:[%s417_s5 + $0x6] sm:$0x3]  ;;  %s192_s15 = sshll.u32 %s317_s14, 4  ;;  %s193_s15 = int_to_ptr.vmem [resolvable:$true] %s192_s15 }
  0x24   :  { %v137_v34 = vunpack.c.0.s8 %v136_v32  ;;  %s284_s0 = scalar_lea.vmem %s193_s15, 128  ;;  %p289_p6 = scmp.lt.s32.totalorder %s193_s15, %s193_s15 }
  0x25   :  { %p41_p11 = scmp.gt.s32.totalorder %s40_s20, 0  ;;  %p208_p12 = scmp.lt.s32.totalorder %s40_s20, 383 }
  0x26   :  { %p48_p13 = scmp.gt.s32.totalorder %s213_s21, 0  ;;  %p214_p0 = scmp.lt.s32.totalorder %s213_s21, 383  ;;  %v140_v41 = vsub.s32 %v137_v34, %v139_v35 }
  0x27   :  { %s420_s20 = smov (!%p41_p11, %s40_s20), 0  ;;  %p55_p1 = scmp.gt.s32.totalorder %s219_s22, 0 }
  0x28   :  { %s422_s21 = smov (!%p48_p13, %s213_s21), 0  ;;  %s424_s20 = smov (!%p208_p12, %s420_s20), 383 }
  0x29   :  { %s426_s21 = smov (!%p214_p0, %s422_s21), 383  ;;  %p220_p2 = scmp.lt.s32.totalorder %s219_s22, 383 }
  0x2a   :  { %s52_s24 = scalar_lea.vmem [#allocation4], %s426_s21  ;;  %s428_s22 = smov (!%p55_p1, %s219_s22), 0 }
  0x2b   :  { %v53_v0 = vld [vmem:[%s52_s24] sm:$0x1]  ;;  %p62_p3 = scmp.gt.s32.totalorder %s225_s23, 0  ;;  %p226_p4 = scmp.lt.s32.totalorder %s225_s23, 383 }
  0x2c   :  { %v69_v1 = vrot.slane %v53_v0, 7  ;;  %s45_s1 = scalar_lea.vmem [#allocation4], %s424_s20  ;;  %s430_s22 = smov (!%p220_p2, %s428_s22), 383 }
  0x2d   :  { %v46_v2 = vld [vmem:[%s45_s1] sm:$0x1]  ;;  %s432_s23 = smov (!%p62_p3, %s225_s23), 0  ;;  %s59_s25 = scalar_lea.vmem [#allocation4], %s430_s22 }
  0x2e   :  { %v60_v3 = vld [vmem:[%s59_s25] sm:$0x1]  ;;  %s434_s23 = smov (!%p226_p4, %s432_s23), 383  ;;  %v78_v4 = vsel %vm77_vm0, %v46_v2, %v69_v1  ;;  %p285_p5 = scmp.ne.s32.totalorder %s193_s15, %s284_s0 }
  0x2f   :  { %v72_v5 = vrot.slane %v60_v3, 6  ;;  %s66_s26 = scalar_lea.vmem [#allocation4], %s434_s23  ;;  %p290_p7 = scmp.lt.s32.totalorder %s284_s0, %s284_s0 }
  0x30   :  { %v67_v6 = vld [vmem:[%s66_s26] sm:$0x1] }
  0x31   :  { %v80_v7 = vsel %vm79_vm1, %v78_v4, %v72_v5  ;;  %v75_v8 = vrot.slane %v67_v6, 5  ;;  %p291_p8 = por %p290_p7, %p289_p6 }
  0x33   :  { %v82_v10 = vsel %vm81_vm2, %v80_v7, %v75_v8  ;;  %p292_p9 = pnand %p291_p8, %p285_p5 }
  0x34   :  { %v90_v11 = vadd.f32 %v231_v9, %v82_v10 }
  0x36   :  { %v92_v12 = vsel %vm91_vm3, %v90_v11, 0.0 }
  0x37   :  { %v93_v13 = vrot.slane %v92_v12, 4 }
  0x39   :  { %v94_v14 = vadd.f32 %v93_v13, %v92_v12 }
  0x3b   :  { %v95_v15 = vrot.slane %v94_v14, 2 }
  0x3d   :  { %v96_v16 = vadd.f32 %v95_v15, %v94_v14 }
  0x3f   :  { %v97_v17 = vrot.slane %v96_v16, 1 }
  0x41   :  { %v98_v18 = vadd.f32 %v97_v17, %v96_v16 }
  0x43   :  { %v100_v19 = vmul.f32 0.25, %v98_v18 }
  0x45   :  { %v101_v20 = vsub.f32 %v90_v11, %v100_v19 }
  0x47   :  { %v102_v21 = vmul.f32 %v101_v20, %v101_v20 }
  0x49   :  { %v103_v22 = vsel %vm91_vm3, %v102_v21, 0.0 }
  0x4a   :  { %v104_v23 = vrot.slane %v103_v22, 4 }
  0x4c   :  { %v105_v24 = vadd.f32 %v104_v23, %v103_v22 }
  0x4e   :  { %v106_v25 = vrot.slane %v105_v24, 2 }
  0x50   :  { %v107_v26 = vadd.f32 %v106_v25, %v105_v24 }
  0x52   :  { %v108_v27 = vrot.slane %v107_v26, 1 }
  0x54   :  { %v109_v28 = vadd.f32 %v108_v27, %v107_v26 }
  0x56   :  { %v110_v29 = vmul.f32 0.25, %v109_v28 }
  0x58   :  { %v111_v30 = vadd.f32 1e-05, %v110_v29 }
  0x5a   :  { %250 = vrsqrt.f32 %v111_v30 }
  0x64   :  { %v251_v36 = vpop.eup %250 }
  0x65   :  { %v113_v38 = vmul.f32 %v251_v36, %v101_v20 }
  0x67   :  { %v121_v40 = vmul.f32 %v232_v37, %v113_v38 }
  0x69   :  { %v129_v42 = vadd.f32 %v233_v39, %v121_v40 }
  0x6b   :  { %v141_v43 = vrot.slane %v129_v42, %v140_v41 }
  0x6d   :  { %v149_v45 = vrot.slane %v141_v43, %v140_v41  ;;  %v142_v46 = vcombine.high %v141_v43, %v141_v43 }
  0x6f   :  { %v162_v48 = vrot.slane %v149_v45, %v161_v44  ;;  %v156_v49 = vrot.slane %v142_v46, %v140_v41  ;;  %v157_v50 = vcombine.high %v149_v45, %v149_v45 }
  0x71   :  { %v179_v53 = vadd.f32 %v162_v48, %v130_v47  ;;  %v166_v54 = vrot.slane %v156_v49, %v161_v44  ;;  %v170_v55 = vrot.slane %v157_v50, %v161_v44  ;;  %v158_v56 = vcombine.high %v156_v49, %v156_v49 }
  0x73   :  { %183 = vst [vmem:[#allocation7] sm:$0x3] %v179_v53  ;;  %v180_v58 = vadd.f32 %v166_v54, %v131_v51  ;;  %v181_v59 = vadd.f32 %v170_v55, %v132_v52  ;;  %v174_v60 = vrot.slane %v158_v56, %v161_v44 }
  0x75   :  { %184 = vst [vmem:[#allocation7 + $0x2] sm:$0x3] %v180_v58  ;;  %185 = vst [vmem:[#allocation7 + $0x4] sm:$0x3] %v181_v59  ;;  %v182_v61 = vadd.f32 %v174_v60, %v133_v57 }
  0x77   :  { %186 = vst [vmem:[#allocation7 + $0x6] sm:$0x3] %v182_v61 }
  0x78   :  { %295 = shalt.err (!%p292_p9)
}
  0x79   :  { %s296_s17 = scalar_lea.hbm %s418_s6, 128 }
  0x7a   :  { %p297_p10 = scmp.ne.s32.totalorder %s418_s6, %s296_s17  ;;  %p300_p11 = scmp.lt.u32.totalorder %s296_s17, %s418_s6 }
  0x7c   :  { %p302_p12 = pnand %p300_p11, %p297_p10 }
  0x7e   :  { %305 = shalt.err (!%p302_p12)
}
  0x7f   :  { %s318_s22 = smov 32   ;;  %s319_s23 = smov 2  }
  0x80   :  { %198 = dma.vmem_to_hbm [thread:$0]  %s193_s15, 128, %s418_s6, [#allocation6], %s318_s22, %s318_s22, %s319_s23  }
  0x81   :  { %310 = dma.done.wait [#allocation6], 128  }
  0x82   :  { %311 = vsyncadd [#allocation6], 4294967168 }
  0x83   :  { %202 = vsyncpa [#allocation5], 1 }
  0x84   :  { %203 = vsyncpa [#allocation6], 1 }

</bundles_post_ra>
